<compile_context>
chip_gen: v6e
topology: v6e:2x2x1
jax: 0.10.0
libtpu: 0.0.40
codegen_flags: <defaults>
</compile_context>

<pallas_src>
import functools

import jax
import jax.numpy as jnp
from jax.experimental import pallas as pl
from jax.experimental.pallas import tpu as pltpu


def _round_up(x, m):
    return (x + m - 1) // m * m


def conv3d_relu_kernel(x_ref, w_ref, o_ref, acc_ref, *, so, wp):
    """One (n, d_out, kd) grid step.

    x_ref:   (1, 1, Cin, Pb)   padded input plane d_out + kd; lane axis is the
                               flattened padded (H+2, W+2) plane.
    w_ref:   (1, 9, Cout, Cin) the 9 (kh, kw) taps of kernel depth-slice kd.
    o_ref:   (1, 1, Cout, So)  output plane, lane axis = flattened (H, W+2)
                               rows padded to a 128 multiple (unmasked stores).
    acc_ref: (Cout, So) f32    accumulator across the kd reduction axis.
    """
    kd = pl.program_id(2)

    @pl.when(kd == 0)
    def _init():
        acc_ref[...] = jnp.zeros_like(acc_ref)

    # The 9 in-plane taps are static lane shifts of the padded plane:
    # output lane s = h*(W+2) + w  needs input lane  s + kh*(W+2) + kw.
    acc = jnp.zeros(acc_ref.shape, jnp.float32)
    for t in range(9):
        kh, kw = divmod(t, 3)
        off = kh * wp + kw                         # static Python int
        xs = x_ref[0, 0, :, pl.ds(off, so)]        # (Cin, So)
        acc += jnp.dot(w_ref[0, t], xs, preferred_element_type=jnp.float32)
    acc_ref[...] += acc

    @pl.when(kd == pl.num_programs(2) - 1)
    def _finalize():
        o_ref[0, 0] = jnp.maximum(acc_ref[...], 0.0).astype(o_ref.dtype)


@functools.partial(jax.jit, static_argnames=("compute_dtype",))
def conv_block(x_ncdhw, weight_oidhw, *, compute_dtype=jnp.bfloat16):
    """Conv3d(kernel=3, stride=1, pad=1, bias=False) + ReLU.

    x_ncdhw:      (N, Cin, D, H, W)
    weight_oidhw: (Cout, Cin, 3, 3, 3)   (PyTorch Conv3d weight layout)
    returns:      (N, Cout, D, H, W), dtype of x
    """
    N, Cin, D, H, W = x_ncdhw.shape
    Cout = weight_oidhw.shape[0]
    Dp, Hp, Wp = D + 2, H + 2, W + 2

    # Output lane extent: H rows of Wp columns (the 2 extra cols per row are
    # junk, stripped below), rounded up to a 128-lane multiple => unmasked vst.
    so = _round_up(H * Wp, 128)
    # Padded-plane lane extent: must hold the real plane (Hp*Wp) and keep every
    # shifted window [off, off + so) in bounds (max off = 2*Wp + 2).
    pb = _round_up(so + 2 * Wp + 2, 128)

    # ---- glue: cast, zero-pad, reorder to (N, D+2, Cin, Pb) ----
    xq = x_ncdhw.astype(compute_dtype)
    xp = jnp.pad(xq, ((0, 0), (0, 0), (1, 1), (1, 1), (1, 1)))       # (N,Cin,Dp,Hp,Wp)
    xp = jnp.transpose(xp, (0, 2, 1, 3, 4)).reshape(N, Dp, Cin, Hp * Wp)
    xp = jnp.pad(xp, ((0, 0), (0, 0), (0, 0), (0, pb - Hp * Wp)))    # (N,Dp,Cin,Pb)

    # (Cout, Cin, 3,3,3) -> (kd, kh*3+kw, Cout, Cin)
    wr = jnp.transpose(weight_oidhw, (2, 3, 4, 0, 1)).reshape(3, 9, Cout, Cin)
    wr = wr.astype(compute_dtype)

    kernel = functools.partial(conv3d_relu_kernel, so=so, wp=Wp)

    # Per-step VMEM: 2x input plane + 2x weight slice + 2x output plane + acc.
    c_bytes = jnp.dtype(compute_dtype).itemsize
    o_bytes = jnp.dtype(x_ncdhw.dtype).itemsize
    need = (2 * Cin * pb * c_bytes + 2 * 9 * Cout * Cin * c_bytes
            + 2 * Cout * so * o_bytes + Cout * so * 4)
    vmem_limit = int(min(96 * 2**20, max(32 * 2**20, 2 * need)))

    out = pl.pallas_call(
        kernel,
        out_shape=jax.ShapeDtypeStruct((N, D, Cout, so), x_ncdhw.dtype),
        grid_spec=pltpu.PrefetchScalarGridSpec(
            num_scalar_prefetch=0,
            grid=(N, D, 3),                       # kd reduction axis last
            in_specs=[
                # One padded plane: block size 1 along padded-D => the block
                # index d + kd is an element offset into the halo'd depth axis.
                pl.BlockSpec((1, 1, Cin, pb), lambda n, d, kd: (n, d + kd, 0, 0)),
                # The 9-tap weight slice for this kd (tiny; constant across n,d
                # so it is only re-fetched when kd changes).
                pl.BlockSpec((1, 9, Cout, Cin), lambda n, d, kd: (kd, 0, 0, 0)),
            ],
            out_specs=pl.BlockSpec((1, 1, Cout, so), lambda n, d, kd: (n, d, 0, 0)),
            scratch_shapes=[pltpu.VMEM((Cout, so), jnp.float32)],
        ),
        compiler_params=pltpu.CompilerParams(
            dimension_semantics=("parallel", "parallel", "arbitrary"),
            vmem_limit_bytes=vmem_limit,
        ),
    )(xp, wr)

    # (N, D, Cout, So): drop lane padding and the 2 junk columns per row.
    out = out[..., : H * Wp].reshape(N, D, Cout, H, Wp)[..., :W]
    return jnp.transpose(out, (0, 2, 1, 3, 4))    # (N, Cout, D, H, W)


if __name__ == "__main__":
    key = jax.random.PRNGKey(0)
    key_x, key_w = jax.random.split(key)

    N, Cin, Cout, D, H, W = 2, 4, 8, 8, 8, 8
    x = jax.random.normal(key_x, (N, Cin, D, H, W), dtype=jnp.float32)
    weight = 0.1 * jax.random.normal(key_w, (Cout, Cin, 3, 3, 3), dtype=jnp.float32)

    # Reference: XLA conv + ReLU (same semantics as the PyTorch module).
    ref = jax.lax.conv_general_dilated(
        x, weight, window_strides=(1, 1, 1),
        padding=((1, 1), (1, 1), (1, 1)),
        dimension_numbers=("NCDHW", "OIDHW", "NCDHW"),
        precision=jax.lax.Precision.HIGHEST)
    ref = jnp.maximum(ref, 0.0)

    # f32 compute path (tight tolerance).
    out_f32 = jax.block_until_ready(conv_block(x, weight, compute_dtype=jnp.float32))
    assert out_f32.shape == (N, Cout, D, H, W)
    assert jnp.allclose(out_f32, ref, atol=2e-3, rtol=2e-3), \
        f"f32 max abs err = {float(jnp.max(jnp.abs(out_f32 - ref)))}"

    # Default fast path: bf16 operands, f32 accumulation.
    out_bf16 = jax.block_until_ready(conv_block(x, weight))
    assert out_bf16.shape == (N, Cout, D, H, W)
    assert jnp.allclose(out_bf16, ref, atol=5e-2, rtol=5e-2), \
        f"bf16 max abs err = {float(jnp.max(jnp.abs(out_bf16 - ref)))}"

    print("KERNEL_OK")
</pallas_src>

<mosaic_0001>
module attributes {stable_mosaic.version = 11 : i64} {
  func.func @conv3d_relu_kernel(%arg0: i32, %arg1: i32, %arg2: i32, %arg3: memref<1x1x4x256xf32, #tpu.memory_space<vmem>>, %arg4: memref<1x9x8x4xf32, #tpu.memory_space<vmem>>, %arg5: memref<1x1x8x128xf32, #tpu.memory_space<vmem>>, %arg6: memref<8x128xf32, #tpu.memory_space<vmem>>) attributes {dimension_semantics = [#tpu.dimension_semantics<parallel>, #tpu.dimension_semantics<parallel>, #tpu.dimension_semantics<arbitrary>], iteration_bounds = array<i64: 2, 8, 3>, scalar_prefetch = 0 : i64, scratch_operands = 1 : i64, tpu.core_type = #tpu.core_type<tc>, window_params = [{transform_indices = @transform_0, window_bounds = array<i64: 1, 1, 4, 256>}, {transform_indices = @transform_1, window_bounds = array<i64: 1, 9, 8, 4>}, {transform_indices = @transform_2, window_bounds = array<i64: 1, 1, 8, 128>}]} {
    %c0_i32 = arith.constant 0 : i32
    %0 = arith.cmpi eq, %arg2, %c0_i32 : i32
    %1 = arith.extui %0 : i1 to i32
    %c0_i32_0 = arith.constant 0 : i32
    %2 = arith.cmpi ne, %1, %c0_i32_0 : i32
    scf.if %2 {
      %cst_72 = arith.constant 0.000000e+00 : f32
      %64 = vector.broadcast %cst_72 : f32 to vector<8x128xf32>
      %c0_73 = arith.constant 0 : index
      %c0_74 = arith.constant 0 : index
      %65 = vector.load %arg6[%c0_73, %c0_74] : memref<8x128xf32, #tpu.memory_space<vmem>>, vector<8x128xf32>
      tpu.vector_store %arg6[%c0_73, %c0_74], %64 {strides = array<i32>} : memref<8x128xf32, #tpu.memory_space<vmem>>, vector<8x128xf32>,
    } else {
    }
    %cst = arith.constant 0.000000e+00 : f32
    %3 = vector.broadcast %cst : f32 to vector<8x128xf32>
    %c0 = arith.constant 0 : index
    %c0_1 = arith.constant 0 : index
    %c0_2 = arith.constant 0 : index
    %c0_3 = arith.constant 0 : index
    %4 = vector.load %arg3[%c0, %c0_1, %c0_2, %c0_3] : memref<1x1x4x256xf32, #tpu.memory_space<vmem>>, vector<1x1x4x128xf32>
    %5 = vector.shape_cast %4 : vector<1x1x4x128xf32> to vector<4x128xf32>
    %c0_4 = arith.constant 0 : index
    %c0_5 = arith.constant 0 : index
    %c0_6 = arith.constant 0 : index
    %c0_7 = arith.constant 0 : index
    %6 = vector.load %arg4[%c0_4, %c0_5, %c0_6, %c0_7] : memref<1x9x8x4xf32, #tpu.memory_space<vmem>>, vector<1x1x8x4xf32>
    %7 = vector.shape_cast %6 : vector<1x1x8x4xf32> to vector<8x4xf32>
    %cst_8 = arith.constant dense<0.000000e+00> : vector<8x128xf32>
    %8 = tpu.matmul %7, %5, %cst_8 {dimension_numbers = #tpu.dot_dimension_numbers<[1], [0], [0], [1], [0, 0, 1, 1], [], []>} : vector<8x4xf32>, vector<4x128xf32>, vector<8x128xf32> -> vector<8x128xf32>
    %9 = arith.addf %3, %8 : vector<8x128xf32>
    %c0_9 = arith.constant 0 : index
    %c0_10 = arith.constant 0 : index
    %c0_11 = arith.constant 0 : index
    %c1 = arith.constant 1 : index
    %10 = vector.load %arg3[%c0_9, %c0_10, %c0_11, %c1] : memref<1x1x4x256xf32, #tpu.memory_space<vmem>>, vector<1x1x4x128xf32>
    %11 = vector.shape_cast %10 : vector<1x1x4x128xf32> to vector<4x128xf32>
    %c0_12 = arith.constant 0 : index
    %c1_13 = arith.constant 1 : index
    %c0_14 = arith.constant 0 : index
    %c0_15 = arith.constant 0 : index
    %12 = vector.load %arg4[%c0_12, %c1_13, %c0_14, %c0_15] : memref<1x9x8x4xf32, #tpu.memory_space<vmem>>, vector<1x1x8x4xf32>
    %13 = vector.shape_cast %12 : vector<1x1x8x4xf32> to vector<8x4xf32>
    %cst_16 = arith.constant dense<0.000000e+00> : vector<8x128xf32>
    %14 = tpu.matmul %13, %11, %cst_16 {dimension_numbers = #tpu.dot_dimension_numbers<[1], [0], [0], [1], [0, 0, 1, 1], [], []>} : vector<8x4xf32>, vector<4x128xf32>, vector<8x128xf32> -> vector<8x128xf32>
    %15 = arith.addf %9, %14 : vector<8x128xf32>
    %c0_17 = arith.constant 0 : index
    %c0_18 = arith.constant 0 : index
    %c0_19 = arith.constant 0 : index
    %c2 = arith.constant 2 : index
    %16 = vector.load %arg3[%c0_17, %c0_18, %c0_19, %c2] : memref<1x1x4x256xf32, #tpu.memory_space<vmem>>, vector<1x1x4x128xf32>
    %17 = vector.shape_cast %16 : vector<1x1x4x128xf32> to vector<4x128xf32>
    %c0_20 = arith.constant 0 : index
    %c2_21 = arith.constant 2 : index
    %c0_22 = arith.constant 0 : index
    %c0_23 = arith.constant 0 : index
    %18 = vector.load %arg4[%c0_20, %c2_21, %c0_22, %c0_23] : memref<1x9x8x4xf32, #tpu.memory_space<vmem>>, vector<1x1x8x4xf32>
    %19 = vector.shape_cast %18 : vector<1x1x8x4xf32> to vector<8x4xf32>
    %cst_24 = arith.constant dense<0.000000e+00> : vector<8x128xf32>
    %20 = tpu.matmul %19, %17, %cst_24 {dimension_numbers = #tpu.dot_dimension_numbers<[1], [0], [0], [1], [0, 0, 1, 1], [], []>} : vector<8x4xf32>, vector<4x128xf32>, vector<8x128xf32> -> vector<8x128xf32>
    %21 = arith.addf %15, %20 : vector<8x128xf32>
    %c0_25 = arith.constant 0 : index
    %c0_26 = arith.constant 0 : index
    %c0_27 = arith.constant 0 : index
    %c10 = arith.constant 10 : index
    %22 = vector.load %arg3[%c0_25, %c0_26, %c0_27, %c10] : memref<1x1x4x256xf32, #tpu.memory_space<vmem>>, vector<1x1x4x128xf32>
    %23 = vector.shape_cast %22 : vector<1x1x4x128xf32> to vector<4x128xf32>
    %c0_28 = arith.constant 0 : index
    %c3 = arith.constant 3 : index
    %c0_29 = arith.constant 0 : index
    %c0_30 = arith.constant 0 : index
    %24 = vector.load %arg4[%c0_28, %c3, %c0_29, %c0_30] : memref<1x9x8x4xf32, #tpu.memory_space<vmem>>, vector<1x1x8x4xf32>
    %25 = vector.shape_cast %24 : vector<1x1x8x4xf32> to vector<8x4xf32>
    %cst_31 = arith.constant dense<0.000000e+00> : vector<8x128xf32>
    %26 = tpu.matmul %25, %23, %cst_31 {dimension_numbers = #tpu.dot_dimension_numbers<[1], [0], [0], [1], [0, 0, 1, 1], [], []>} : vector<8x4xf32>, vector<4x128xf32>, vector<8x128xf32> -> vector<8x128xf32>
    %27 = arith.addf %21, %26 : vector<8x128xf32>
    %c0_32 = arith.constant 0 : index
    %c0_33 = arith.constant 0 : index
    %c0_34 = arith.constant 0 : index
    %c11 = arith.constant 11 : index
    %28 = vector.load %arg3[%c0_32, %c0_33, %c0_34, %c11] : memref<1x1x4x256xf32, #tpu.memory_space<vmem>>, vector<1x1x4x128xf32>
    %29 = vector.shape_cast %28 : vector<1x1x4x128xf32> to vector<4x128xf32>
    %c0_35 = arith.constant 0 : index
    %c4 = arith.constant 4 : index
    %c0_36 = arith.constant 0 : index
    %c0_37 = arith.constant 0 : index
    %30 = vector.load %arg4[%c0_35, %c4, %c0_36, %c0_37] : memref<1x9x8x4xf32, #tpu.memory_space<vmem>>, vector<1x1x8x4xf32>
    %31 = vector.shape_cast %30 : vector<1x1x8x4xf32> to vector<8x4xf32>
    %cst_38 = arith.constant dense<0.000000e+00> : vector<8x128xf32>
    %32 = tpu.matmul %31, %29, %cst_38 {dimension_numbers = #tpu.dot_dimension_numbers<[1], [0], [0], [1], [0, 0, 1, 1], [], []>} : vector<8x4xf32>, vector<4x128xf32>, vector<8x128xf32> -> vector<8x128xf32>
    %33 = arith.addf %27, %32 : vector<8x128xf32>
    %c0_39 = arith.constant 0 : index
    %c0_40 = arith.constant 0 : index
    %c0_41 = arith.constant 0 : index
    %c12 = arith.constant 12 : index
    %34 = vector.load %arg3[%c0_39, %c0_40, %c0_41, %c12] : memref<1x1x4x256xf32, #tpu.memory_space<vmem>>, vector<1x1x4x128xf32>
    %35 = vector.shape_cast %34 : vector<1x1x4x128xf32> to vector<4x128xf32>
    %c0_42 = arith.constant 0 : index
    %c5 = arith.constant 5 : index
    %c0_43 = arith.constant 0 : index
    %c0_44 = arith.constant 0 : index
    %36 = vector.load %arg4[%c0_42, %c5, %c0_43, %c0_44] : memref<1x9x8x4xf32, #tpu.memory_space<vmem>>, vector<1x1x8x4xf32>
    %37 = vector.shape_cast %36 : vector<1x1x8x4xf32> to vector<8x4xf32>
    %cst_45 = arith.constant dense<0.000000e+00> : vector<8x128xf32>
    %38 = tpu.matmul %37, %35, %cst_45 {dimension_numbers = #tpu.dot_dimension_numbers<[1], [0], [0], [1], [0, 0, 1, 1], [], []>} : vector<8x4xf32>, vector<4x128xf32>, vector<8x128xf32> -> vector<8x128xf32>
    %39 = arith.addf %33, %38 : vector<8x128xf32>
    %c0_46 = arith.constant 0 : index
    %c0_47 = arith.constant 0 : index
    %c0_48 = arith.constant 0 : index
    %c20 = arith.constant 20 : index
    %40 = vector.load %arg3[%c0_46, %c0_47, %c0_48, %c20] : memref<1x1x4x256xf32, #tpu.memory_space<vmem>>, vector<1x1x4x128xf32>
    %41 = vector.shape_cast %40 : vector<1x1x4x128xf32> to vector<4x128xf32>
    %c0_49 = arith.constant 0 : index
    %c6 = arith.constant 6 : index
    %c0_50 = arith.constant 0 : index
    %c0_51 = arith.constant 0 : index
    %42 = vector.load %arg4[%c0_49, %c6, %c0_50, %c0_51] : memref<1x9x8x4xf32, #tpu.memory_space<vmem>>, vector<1x1x8x4xf32>
    %43 = vector.shape_cast %42 : vector<1x1x8x4xf32> to vector<8x4xf32>
    %cst_52 = arith.constant dense<0.000000e+00> : vector<8x128xf32>
    %44 = tpu.matmul %43, %41, %cst_52 {dimension_numbers = #tpu.dot_dimension_numbers<[1], [0], [0], [1], [0, 0, 1, 1], [], []>} : vector<8x4xf32>, vector<4x128xf32>, vector<8x128xf32> -> vector<8x128xf32>
    %45 = arith.addf %39, %44 : vector<8x128xf32>
    %c0_53 = arith.constant 0 : index
    %c0_54 = arith.constant 0 : index
    %c0_55 = arith.constant 0 : index
    %c21 = arith.constant 21 : index
    %46 = vector.load %arg3[%c0_53, %c0_54, %c0_55, %c21] : memref<1x1x4x256xf32, #tpu.memory_space<vmem>>, vector<1x1x4x128xf32>
    %47 = vector.shape_cast %46 : vector<1x1x4x128xf32> to vector<4x128xf32>
    %c0_56 = arith.constant 0 : index
    %c7 = arith.constant 7 : index
    %c0_57 = arith.constant 0 : index
    %c0_58 = arith.constant 0 : index
    %48 = vector.load %arg4[%c0_56, %c7, %c0_57, %c0_58] : memref<1x9x8x4xf32, #tpu.memory_space<vmem>>, vector<1x1x8x4xf32>
    %49 = vector.shape_cast %48 : vector<1x1x8x4xf32> to vector<8x4xf32>
    %cst_59 = arith.constant dense<0.000000e+00> : vector<8x128xf32>
    %50 = tpu.matmul %49, %47, %cst_59 {dimension_numbers = #tpu.dot_dimension_numbers<[1], [0], [0], [1], [0, 0, 1, 1], [], []>} : vector<8x4xf32>, vector<4x128xf32>, vector<8x128xf32> -> vector<8x128xf32>
    %51 = arith.addf %45, %50 : vector<8x128xf32>
    %c0_60 = arith.constant 0 : index
    %c0_61 = arith.constant 0 : index
    %c0_62 = arith.constant 0 : index
    %c22 = arith.constant 22 : index
    %52 = vector.load %arg3[%c0_60, %c0_61, %c0_62, %c22] : memref<1x1x4x256xf32, #tpu.memory_space<vmem>>, vector<1x1x4x128xf32>
    %53 = vector.shape_cast %52 : vector<1x1x4x128xf32> to vector<4x128xf32>
    %c0_63 = arith.constant 0 : index
    %c8 = arith.constant 8 : index
    %c0_64 = arith.constant 0 : index
    %c0_65 = arith.constant 0 : index
    %54 = vector.load %arg4[%c0_63, %c8, %c0_64, %c0_65] : memref<1x9x8x4xf32, #tpu.memory_space<vmem>>, vector<1x1x8x4xf32>
    %55 = vector.shape_cast %54 : vector<1x1x8x4xf32> to vector<8x4xf32>
    %cst_66 = arith.constant dense<0.000000e+00> : vector<8x128xf32>
    %56 = tpu.matmul %55, %53, %cst_66 {dimension_numbers = #tpu.dot_dimension_numbers<[1], [0], [0], [1], [0, 0, 1, 1], [], []>} : vector<8x4xf32>, vector<4x128xf32>, vector<8x128xf32> -> vector<8x128xf32>
    %57 = arith.addf %51, %56 : vector<8x128xf32>
    %c0_67 = arith.constant 0 : index
    %c0_68 = arith.constant 0 : index
    %58 = vector.load %arg6[%c0_67, %c0_68] : memref<8x128xf32, #tpu.memory_space<vmem>>, vector<8x128xf32>
    %59 = arith.addf %58, %57 : vector<8x128xf32>
    %c0_69 = arith.constant 0 : index
    %c0_70 = arith.constant 0 : index
    %60 = vector.load %arg6[%c0_69, %c0_70] : memref<8x128xf32, #tpu.memory_space<vmem>>, vector<8x128xf32>
    tpu.vector_store %arg6[%c0_69, %c0_70], %59 {strides = array<i32>} : memref<8x128xf32, #tpu.memory_space<vmem>>, vector<8x128xf32>,
    %c2_i32 = arith.constant 2 : i32
    %61 = arith.cmpi eq, %arg2, %c2_i32 : i32
    %62 = arith.extui %61 : i1 to i32
    %c0_i32_71 = arith.constant 0 : i32
    %63 = arith.cmpi ne, %62, %c0_i32_71 : i32
    scf.if %63 {
      %c0_72 = arith.constant 0 : index
      %c0_73 = arith.constant 0 : index
      %64 = vector.load %arg6[%c0_72, %c0_73] : memref<8x128xf32, #tpu.memory_space<vmem>>, vector<8x128xf32>
      %cst_74 = arith.constant 0.000000e+00 : f32
      %65 = vector.broadcast %cst_74 : f32 to vector<8x128xf32>
      %66 = arith.maximumf %64, %65 : vector<8x128xf32>
      %c0_75 = arith.constant 0 : index
      %c0_76 = arith.constant 0 : index
      %c0_77 = arith.constant 0 : index
      %c0_78 = arith.constant 0 : index
      %67 = vector.load %arg5[%c0_75, %c0_76, %c0_77, %c0_78] : memref<1x1x8x128xf32, #tpu.memory_space<vmem>>, vector<1x1x8x128xf32>
      %68 = vector.shape_cast %67 : vector<1x1x8x128xf32> to vector<8x128xf32>
      %69 = vector.shape_cast %66 : vector<8x128xf32> to vector<1x1x8x128xf32>
      tpu.vector_store %arg5[%c0_75, %c0_76, %c0_77, %c0_78], %69 {strides = array<i32>} : memref<1x1x8x128xf32, #tpu.memory_space<vmem>>, vector<1x1x8x128xf32>,
    } else {
    }
    return
  }
  func.func @transform_0(%arg0: i32, %arg1: i32, %arg2: i32) -> (i32, i32, i32, i32) {
    %0 = arith.addi %arg1, %arg2 : i32
    %c0_i32 = arith.constant 0 : i32
    %c0_i32_0 = arith.constant 0 : i32
    %c0_i32_1 = arith.constant 0 : i32
    return %arg0, %0, %c0_i32, %c0_i32_0 : i32, i32, i32, i32
  }
  func.func @transform_1(%arg0: i32, %arg1: i32, %arg2: i32) -> (i32, i32, i32, i32) {
    %c0_i32 = arith.constant 0 : i32
    %c0_i32_0 = arith.constant 0 : i32
    %c0_i32_1 = arith.constant 0 : i32
    %c0_i32_2 = arith.constant 0 : i32
    return %arg2, %c0_i32, %c0_i32_0, %c0_i32_1 : i32, i32, i32, i32
  }
  func.func @transform_2(%arg0: i32, %arg1: i32, %arg2: i32) -> (i32, i32, i32, i32) {
    %c0_i32 = arith.constant 0 : i32
    %c0_i32_0 = arith.constant 0 : i32
    %c0_i32_1 = arith.constant 0 : i32
    return %arg0, %arg1, %c0_i32, %c0_i32_0 : i32, i32, i32, i32
  }
}

</mosaic_0001>

<bundles_post_ra>
// kernel: conv_block.1
= control target key start
LH: loop header
LB: loop body
LE: loop exit
PB: predicated region body
PF: predicated region fallthrough
CT: control target
= control target key end

     0   :  { %s1364_s9 = smov 0   ;;  %s1366_s10 = smov 0   ;;  %s1507_s0 = inlined_call_operand.vmem [shape: f32[2,10,4,256], index: 0, kind: input, shape index: {}]   ;;  %s1508_s1 = inlined_call_operand.vmem [shape: f32[3,9,8,4], index: 1, kind: input, shape index: {}]   ;;  %s1509_s2 = inlined_call_operand.vmem [shape: f32[2,8,8,128], index: 2, kind: output, shape index: {}]  }
   0x1   :  { %s1368_s11 = smov 0   ;;  %s1370_s12 = smov 0  }
   0x2   :  { %s1372_s13 = smov 0   ;;  %s1374_s14 = smov 0  }
   0x3   :  { %s1376_s15 = smov 0  }
   0x4 LB: > { %s24_s16 = sadd.s32 1, %s1324_s12  ;;  %s27_s17 = sadd.s32 1, %s1328_s13  ;;  %s1336_s15 = sphi %s1376_s15, %s12_s15   ;;  %s1332_s14 = sphi %s1374_s14, %s1515_s14   ;;  %s1328_s13 = sphi %s1372_s13, %s1514_s13   ;;  %s1324_s12 = sphi %s1370_s12, %s1513_s12   ;;  %s1320_s11 = sphi %s1368_s11, %s1512_s11   ;;  %s1316_s10 = sphi %s1366_s10, %s1511_s10   ;;  %s1312_s9 = sphi %s1364_s9, %s1510_s9  }
   0x5   : > { %p25_p0 = scmp.ge.s32.totalorder %s24_s16, 3  ;;  %p1113_p1 = scmp.ge.s32.totalorder %s1336_s15, 1 }
   0x6   : > { %p153_p2 = scmp.lt.s32.totalorder %s1336_s15, 49  ;;  %s31_s18 = sadd.s32 1, %s1332_s14 }
   0x7   : > { %s1517_s16 = smov (%p25_p0, %s24_s16), 0  ;;  %s1519_s17 = smov (!%p25_p0, %s27_s17), %s1328_s13 }
   0x8   : > { %p154_p3 = pnand %p1113_p1, %p153_p2  ;;  %p29_p4 = scmp.ge.s32.totalorder %s1519_s17, 8 }
   0x9   : > { %s188_s19 = sadd.s32 (!%p154_p3), %s1312_s9, %s1316_s10  ;;  %p189_p6 = scmp.lt.s32.totalorder (!%p154_p3), %s1320_s11, 1 }
   0xa   : > { %s1521_s17 = smov (%p29_p4, %s1519_s17), 0  ;;  %s1523_s18 = smov (!%p29_p4, %s31_s18), %s1332_s14 }
   0xb   : > { %p33_p5 = scmp.ge.s32.totalorder %s1523_s18, 2  ;;  %157 = sbr.rel (%p154_p3) target bundleno = 384 (0x180), region = 28 }
   0xc   : > { %p191_p7 = scmp.lt.s32.totalorder (!%p154_p3), %s188_s19, 9  ;;  %p199_p8 = scmp.lt.s32.totalorder (!%p154_p3), %s1312_s9, 2 }
   0xd   : > { %s1525_s18 = smov (%p33_p5, %s1523_s18), 0  ;;  %p206_p9 = scmp.lt.s32.totalorder (!%p154_p3), %s1316_s10, 7 }
   0xe   : > { %p1119_p10 = scmp.ne.s32.totalorder (!%p154_p3), %s1312_s9, 0 }
  0x10   : > { %s1527_s11 = smov (!%p189_p6, %s1320_s11), 1  ;;  %s1529_s19 = smov (!%p191_p7, %s188_s19), 9 }
  0x11   : > { %s1212_s20 = smul.u32 20, %s1527_s11  ;;  %s1114_s21 = sshll.u32 %s1529_s19, 1 }
  0x12   : > { %s1117_s27 = sshll.u32 %s1527_s11, 3  ;;  %s1531_s10 = smov (!%p206_p9, %s1316_s10), 7 }
  0x13   : > { %s195_s22 = sadd.s32 %s1212_s20, %s1114_s21  ;;  %s209_s30 = sadd.s32 %s1117_s27, %s1531_s10 }
  0x14   : > { %s1115_s23 = sshll.u32 %s195_s22, 2  ;;  %s1118_s6 = sshll.u32 %s209_s30, 3 }
  0x15   : > { %s197_s26 = scalar_lea.vmem %s1507_s0, %s1115_s23  ;;  %s1427_s19 = scalar_lea.vmem %s1509_s2, %s1118_s6 }
  0x16   : > { %s200_s28 = scalar_select %p199_p8, %s1312_s9, 2 }
  0x17   : > { %215 = sbr.rel (%p1119_p10) target bundleno = 30 (0x1e), region = 32 }
  0x18   : > { %s1213_s29 = smul.u32 72, %s200_s28 }
  0x1a   : > { %s1422_s5 = scalar_lea.vmem %s1508_s1, %s1213_s29 }
  0x1c   : > { %v1338_v0 = vmov 0.0  }
  0x1d   : > { %216 = vst [vmem:[#allocation2] sm:$0xff] %v1338_v0 }
  0x1e PF: > { %v383_v1 = vld [vmem:[%s197_s26] sm:$0xff]  ;;  %s1339_s10 = smov 126   ;;  %s1340_s11 = smov 127   ;;  %v1341_v3 = vmov 0.0   ;;  %vm1342_vm0 = vmmov 0   ;;  %vm234_vm1 = vcmask 1043456  }
  0x1f   : > { %388 = vrot.lane.b32.xlu1 %v383_v1, %s1339_s10  ;;  %v387_v2 = vcombine.high %v383_v1, %v383_v1  ;;  %224 = vrot.lane.b32.xlu0 %v383_v1, %s1340_s11  ;;  %v217_v4 = vld [vmem:[%s197_s26] sm:$0xf]  ;;  %vm230_vm2 = vcmask 31744   ;;  %s1343_s20 = smov 118   ;;  %s1344_s21 = smov 117   ;;  %vm228_vm3 = vcmask 1039360  }
  0x20   : > { %1167 = vmatprep.subr.mxu0 %v1341_v3  ;;  %1169 = vmatprep.mubr.msk.f32.mxu0 %vm1342_vm0, %v1341_v3  ;;  %v218_v5 = vld [vmem:[%s1422_s5] sm:$0xff]  ;;  %s1345_s22 = smov 116   ;;  %s1346_s23 = smov 108   ;;  %vm392_vm4 = vcmask 1031168   ;;  %v1120_v10 = vld [vmem:[%s1422_s5 + $0x8] sm:$0xff]  ;;  %vm479_vm5 = vcmask 965632  }
  0x21   : > { %1172 = vmatprep.subr.mxu1 %v1341_v3  ;;  %1174 = vmatprep.mubr.msk.f32.mxu1 %vm1342_vm0, %v1341_v3  ;;  %s1347_s24 = smov 107   ;;  %s1348_s25 = smov 106   ;;  %v1125_v15 = vld [vmem:[%s1422_s5 + $0x10] sm:$0xff]  ;;  %v1128_v17 = vld [vmem:[%s1422_s5 + $0x18] sm:$0xff]  ;;  %vm566_vm6 = vcmask 957440   ;;  %v1131_v20 = vld [vmem:[%s1422_s5 + $0x20] sm:$0xff] }
  0x22   : > { %1173 = vmatpush3.msk.msra.mxu1 %vm234_vm1, %v217_v4  ;;  %vm653_vm7 = vcmask 949248   ;;  %v1134_v24 = vld [vmem:[%s1422_s5 + $0x28] sm:$0xff]  ;;  %vm740_vm8 = vcmask 883712   ;;  %v1137_v28 = vld [vmem:[%s1422_s5 + $0x30] sm:$0xff]  ;;  %vm827_vm9 = vcmask 875520   ;;  %v1140_v32 = vld [vmem:[%s1422_s5 + $0x38] sm:$0xff] }
  0x23   : > { %390 = vrot.lane.b32.xlu1 %v387_v2, %s1339_s10  ;;  %226 = vrot.lane.b32.xlu0 %v387_v2, %s1340_s11  ;;  %vm914_vm10 = vcmask 867328   ;;  %v1143_v36 = vld [vmem:[%s1422_s5 + $0x40] sm:$0xff]  ;;  %p1146_p11 = scmp.ne.s32.totalorder %s1312_s9, 2 }
  0x24   : > { %1182 = vmatprep.subr.mxu1 %v1341_v3  ;;  %1175 = vmatmul.mubr.msk.f32.vlgmr.msra.gmra.mxu1 %vm230_vm2, %v218_v5  ;;  %v992_v62 = vld [vmem:[#allocation2] sm:$0xff] }
  0x25   : > { %1184 = vmatprep.mubr.msk.f32.mxu1 %vm1342_vm0, %v1341_v3 }
  0x27   : > { %477 = vrot.lane.b32.xlu1 %v387_v2, %s1343_s20  ;;  %475 = vrot.lane.b32.xlu0 %v383_v1, %s1343_s20 }
  0x2b   : > { %564 = vrot.lane.b32.xlu1 %v387_v2, %s1344_s21  ;;  %562 = vrot.lane.b32.xlu0 %v383_v1, %s1344_s21 }
  0x2f   : > { %651 = vrot.lane.b32.xlu1 %v387_v2, %s1345_s22  ;;  %649 = vrot.lane.b32.xlu0 %v383_v1, %s1345_s22 }
  0x33   : > { %738 = vrot.lane.b32.xlu1 %v387_v2, %s1346_s23  ;;  %736 = vrot.lane.b32.xlu0 %v383_v1, %s1346_s23 }
  0x37   : > { %825 = vrot.lane.b32.xlu1 %v387_v2, %s1347_s24  ;;  %823 = vrot.lane.b32.xlu0 %v383_v1, %s1347_s24 }
  0x3b   : > { %912 = vrot.lane.b32.xlu1 %v387_v2, %s1348_s25  ;;  %910 = vrot.lane.b32.xlu0 %v383_v1, %s1348_s25 }
  0x91   : > { %v389_v6 = vpop.permute.xlu1 %388  ;;  %v225_v7 = vpop.permute.xlu0 %224 }
  0x95   : > { %v391_v8 = vpop.permute.xlu1 %390  ;;  %v227_v9 = vpop.permute.xlu0 %226 }
  0x96   : > { %v229_v11 = vsel %vm228_vm3, %v225_v7, %v227_v9  ;;  %v393_v12 = vsel %vm392_vm4, %v389_v6, %v391_v8 }
  0x97   : > { %1168 = vmatpush3.msk.msra.mxu0 %vm234_vm1, %v229_v11 }
  0x98   : > { %1177 = vmatprep.subr.mxu0 %v1341_v3  ;;  %1170 = vmatmul.mubr.msk.f32.vlgmr.msra.gmra.mxu0 %vm230_vm2, %v1120_v10 }
  0x99   : > { %v478_v13 = vpop.permute.xlu1 %477  ;;  %1178 = vmatpush3.msk.msra.mxu0 %vm234_vm1, %v393_v12  ;;  %v476_v14 = vpop.permute.xlu0 %475  ;;  %1179 = vmatprep.mubr.msk.f32.mxu0 %vm1342_vm0, %v1341_v3 }
  0x9a   : > { %v480_v16 = vsel %vm479_vm5, %v476_v14, %v478_v13  ;;  %1187 = vmatprep.subr.mxu0 %v1341_v3 }
  0x9b   : > { %1183 = vmatpush3.msk.msra.mxu1 %vm234_vm1, %v480_v16 }
  0x9c   : > { %1180 = vmatmul.mubr.msk.f32.vlgmr.msra.gmra.mxu0 %vm230_vm2, %v1125_v15  ;;  %1192 = vmatprep.subr.mxu1 %v1341_v3 }
  0x9d   : > { %v565_v18 = vpop.permute.xlu1 %564  ;;  %v563_v19 = vpop.permute.xlu0 %562  ;;  %1185 = vmatmul.mubr.msk.f32.vlgmr.msra.gmra.mxu1 %vm230_vm2, %v1128_v17  ;;  %1189 = vmatprep.mubr.msk.f32.mxu0 %vm1342_vm0, %v1341_v3 }
  0x9e   : > { %v567_v21 = vsel %vm566_vm6, %v563_v19, %v565_v18  ;;  %1194 = vmatprep.mubr.msk.f32.mxu1 %vm1342_vm0, %v1341_v3 }
  0x9f   : > { %1188 = vmatpush3.msk.msra.mxu0 %vm234_vm1, %v567_v21 }
  0xa0   : > { %1197 = vmatprep.subr.mxu0 %v1341_v3  ;;  %1190 = vmatmul.mubr.msk.f32.vlgmr.msra.gmra.mxu0 %vm230_vm2, %v1131_v20 }
  0xa1   : > { %v652_v22 = vpop.permute.xlu1 %651  ;;  %v650_v23 = vpop.permute.xlu0 %649  ;;  %1199 = vmatprep.mubr.msk.f32.mxu0 %vm1342_vm0, %v1341_v3 }
  0xa2   : > { %v654_v25 = vsel %vm653_vm7, %v650_v23, %v652_v22 }
  0xa3   : > { %1193 = vmatpush3.msk.msra.mxu1 %vm234_vm1, %v654_v25 }
  0xa4   : > { %1202 = vmatprep.subr.mxu1 %v1341_v3  ;;  %1195 = vmatmul.mubr.msk.f32.vlgmr.msra.gmra.mxu1 %vm230_vm2, %v1134_v24 }
  0xa5   : > { %v739_v26 = vpop.permute.xlu1 %738  ;;  %v737_v27 = vpop.permute.xlu0 %736  ;;  %1204 = vmatprep.mubr.msk.f32.mxu1 %vm1342_vm0, %v1341_v3 }
  0xa6   : > { %v741_v29 = vsel %vm740_vm8, %v737_v27, %v739_v26 }
  0xa7   : > { %1198 = vmatpush3.msk.msra.mxu0 %vm234_vm1, %v741_v29 }
  0xa8   : > { %1200 = vmatmul.mubr.msk.f32.vlgmr.msra.gmra.mxu0 %vm230_vm2, %v1137_v28  ;;  %1207 = vmatprep.subr.mxu0 %v1341_v3 }
  0xa9   : > { %v826_v30 = vpop.permute.xlu1 %825  ;;  %v824_v31 = vpop.permute.xlu0 %823  ;;  %1209 = vmatprep.mubr.msk.f32.mxu0 %vm1342_vm0, %v1341_v3 }
  0xaa   : > { %v828_v33 = vsel %vm827_vm9, %v824_v31, %v826_v30 }
  0xab   : > { %1203 = vmatpush3.msk.msra.mxu1 %vm234_vm1, %v828_v33 }
  0xac   : > { %1205 = vmatmul.mubr.msk.f32.vlgmr.msra.gmra.mxu1 %vm230_vm2, %v1140_v32 }
  0xad   : > { %v913_v34 = vpop.permute.xlu1 %912  ;;  %v911_v35 = vpop.permute.xlu0 %910 }
  0xae   : > { %v915_v37 = vsel %vm914_vm10, %v911_v35, %v913_v34 }
  0xaf   : > { %1208 = vmatpush3.msk.msra.mxu0 %vm234_vm1, %v915_v37 }
  0xb0   : > { %1210 = vmatmul.mubr.msk.f32.vlgmr.msra.gmra.mxu0 %vm230_vm2, %v1143_v36 }
  0xe4   : > { %v379_v38 = vpop.f32.mrf.mxu1 }
  0xe6   : > { %v1176_v39 = vpop.f32.mrf.mxu1 }
 0x158   : > { %v303_v40 = vpop.f32.mrf.mxu0 }
 0x159   : > { %v380_v41 = vadd.f32 %v379_v38, %v303_v40 }
 0x15a   : > { %v1171_v42 = vpop.f32.mrf.mxu0 }
 0x15c   : > { %v465_v43 = vpop.f32.mrf.mxu0 }
 0x15d   : > { %v469_v44 = vadd.f32 %v465_v43, %v380_v41  ;;  %v552_v45 = vpop.f32.mrf.mxu1 }
 0x15e   : > { %v1181_v46 = vpop.f32.mrf.mxu0 }
 0x15f   : > { %v556_v47 = vadd.f32 %v552_v45, %v469_v44  ;;  %v1186_v48 = vpop.f32.mrf.mxu1 }
 0x160   : > { %v639_v49 = vpop.f32.mrf.mxu0 }
 0x161   : > { %v643_v51 = vadd.f32 %v639_v49, %v556_v47 }
 0x162   : > { %v1191_v50 = vpop.f32.mrf.mxu0 }
 0x164   : > { %v726_v52 = vpop.f32.mrf.mxu1 }
 0x165   : > { %v730_v54 = vadd.f32 %v726_v52, %v643_v51 }
 0x166   : > { %v1196_v53 = vpop.f32.mrf.mxu1 }
 0x168   : > { %v813_v55 = vpop.f32.mrf.mxu0 }
 0x169   : > { %v817_v57 = vadd.f32 %v813_v55, %v730_v54 }
 0x16a   : > { %v1201_v56 = vpop.f32.mrf.mxu0 }
 0x16c   : > { %v900_v58 = vpop.f32.mrf.mxu1 }
 0x16d   : > { %v904_v60 = vadd.f32 %v900_v58, %v817_v57 }
 0x16e   : > { %v1206_v59 = vpop.f32.mrf.mxu1 }
 0x170   : > { %v987_v61 = vpop.f32.mrf.mxu0 }
 0x171   : > { %v991_v63 = vadd.f32 %v987_v61, %v904_v60  ;;  %998 = sbr.rel (%p1146_p11) target bundleno = 384 (0x180), region = 36 }
 0x172   : > { %v1211_v0 = vpop.f32.mrf.mxu0 }
 0x173   : > { %v993_v1 = vadd.f32 %v992_v62, %v991_v63 }
 0x175   : > { %994 = vst [vmem:[#allocation2] sm:$0xff] %v993_v1 }
 0x17c   : > { %v999_v2 = vld [vmem:[#allocation2] sm:$0xff] }
 0x17d   : > { %v1000_v3 = vmax.f32 %v999_v2, 0.0 }
 0x17f   : > { %1001 = vst [vmem:[%s1427_s19] sm:$0xff] %v1000_v3 }
 0x180 PF: > { %s12_s15 = sadd.s32 1, %s1336_s15   ;;  %s1510_s9 = smov %s1324_s12 }
 0x181   : > { %p9_p12 = scmp.ge.s32.totalorder %s12_s15, 50   ;;  %s1511_s10 = smov %s1328_s13 }
 0x182   : > { %s1512_s11 = smov %s1332_s14  ;;  %s1513_s12 = smov %s1517_s16 }
 0x183   : > { %s1514_s13 = smov %s1521_s17  ;;  %s1515_s14 = smov %s1525_s18 }
 0x184   :  { %11 = sbr.rel (!%p9_p12) target bundleno = 4 (0x4), region = 77 }

</bundles_post_ra>
